<compile_context>
chip_gen: v7x
topology: tpu7x:2x2x1
jax: 0.10.0
libtpu: 0.0.40
codegen_flags: <defaults>
</compile_context>

<pallas_src>
from typing import NamedTuple, Tuple

import jax
import jax.numpy as jnp
from jax.experimental import pallas as pl
from jax.experimental.pallas import tpu as pltpu

EVO_DIM = 72
GRAPH_DIM = 72
HIDDEN_DIM = 64
H2 = 128   # feature_processor layer-1 width
H3 = 64
H4 = 32

_COMPUTE_DTYPE = jnp.bfloat16  # MXU-native; accumulation stays f32.


def _round_up(x, m):
    return ((x + m - 1) // m) * m


# ----------------------------------------------------------------------------- kernels

def _mlp_tail(h128_f32, b2, w3_ref, b3_ref, w4_ref, b4_ref, w5_ref, b5_ref, out_ref):
    """Shared layers 2..5: (TB,128) pre-bias f32 activations -> (TB,1) activity."""
    h = jnp.maximum(h128_f32 + b2, 0.0).astype(_COMPUTE_DTYPE)            # (TB, 128)
    h = jnp.dot(h, w3_ref[...], preferred_element_type=jnp.float32) + b3_ref[...]
    h = jnp.maximum(h, 0.0).astype(_COMPUTE_DTYPE)                        # (TB, 64)
    h = jnp.dot(h, w4_ref[...], preferred_element_type=jnp.float32) + b4_ref[...]
    h = jnp.maximum(h, 0.0)                                               # (TB, 32) f32
    # predictor Linear(32, 1) as VPU multiply + lane reduce (skip a near-empty MXU pass)
    out = jnp.sum(h * w5_ref[...], axis=-1, keepdims=True) + b5_ref[...]
    out_ref[...] = out.astype(out_ref.dtype)                              # (TB, 1)


def _fused_kernel(ev_ref, gf_ref, wf_ref, w2a_ref, b1_ref, b2_ref,
                  w3_ref, b3_ref, w4_ref, b4_ref, w5_ref, b5_ref, out_ref):
    """v6e/v7x path: ev@W1 and gf@W2b fused into one block-diagonal matmul."""
    ev = ev_ref[...].astype(_COMPUTE_DTYPE)                               # (TB, 72)
    gf = gf_ref[...].astype(_COMPUTE_DTYPE)                               # (TB, 72)
    # gf first so the result split lands exactly on the 128-lane vreg boundary.
    lhs = jnp.concatenate([gf, ev], axis=1)                               # (TB, 144)
    fused = jnp.dot(lhs, wf_ref[...], preferred_element_type=jnp.float32)  # (TB, 192)
    gf_part = fused[:, :H2]                                               # gf @ W2b
    ev_feat = jnp.maximum(fused[:, H2:] + b1_ref[...], 0.0)               # relu(ev@W1+b1)
    ev_feat = ev_feat.astype(_COMPUTE_DTYPE)                              # (TB, 64)
    h128 = jnp.dot(ev_feat, w2a_ref[...], preferred_element_type=jnp.float32) + gf_part
    _mlp_tail(h128, b2_ref[...], w3_ref, b3_ref, w4_ref, b4_ref, w5_ref, b5_ref, out_ref)


def _split_kernel(ev_ref, gf_ref, w1_ref, w2b_ref, w2a_ref, b1_ref, b2_ref,
                  w3_ref, b3_ref, w4_ref, b4_ref, w5_ref, b5_ref, out_ref):
    """v5e path (128x128 MXU): keep the two K=72 matmuls separate."""
    ev = ev_ref[...].astype(_COMPUTE_DTYPE)
    gf = gf_ref[...].astype(_COMPUTE_DTYPE)
    ev_feat = jnp.dot(ev, w1_ref[...], preferred_element_type=jnp.float32)
    ev_feat = jnp.maximum(ev_feat + b1_ref[...], 0.0).astype(_COMPUTE_DTYPE)
    h128 = (jnp.dot(ev_feat, w2a_ref[...], preferred_element_type=jnp.float32)
            + jnp.dot(gf, w2b_ref[...], preferred_element_type=jnp.float32))
    _mlp_tail(h128, b2_ref[...], w3_ref, b3_ref, w4_ref, b4_ref, w5_ref, b5_ref, out_ref)


# ----------------------------------------------------------------- params / wrapper

class PreparedParams(NamedTuple):
    fuse_first_layers: bool
    tensors: Tuple[jax.Array, ...]


def _default_fuse() -> bool:
    # Block-diagonal first-layer fusion pays off on 256x256 MXUs (v6e / v7x); on
    # v5e-class 128x128 MXUs the split form maps better.
    try:
        kind = jax.devices()[0].device_kind.lower()
    except Exception:
        return True
    return ("v6" in kind) or ("v7" in kind)


def prepare_params(params, *, fuse_first_layers=None) -> PreparedParams:
    """One-time weight prep (W2 split / block-diag build / casts / bias reshapes),
    hoisted out of the forward path so per-call launch overhead stays minimal."""
    if fuse_first_layers is None:
        fuse_first_layers = _default_fuse()
    w1, b1, w2, b2, w3, b3, w4, b4, w5, b5 = params
    cd = _COMPUTE_DTYPE
    w2a = w2[:HIDDEN_DIM, :]     # (64, 128): ev_feat rows of W2
    w2b = w2[HIDDEN_DIM:, :]     # (72, 128): graph_features rows of W2

    if fuse_first_layers:
        # [gf | ev] @ [[W2b, 0], [0, W1]]  ->  [:, :128] = gf@W2b, [:, 128:] = ev@W1
        wf = jnp.zeros((GRAPH_DIM + EVO_DIM, H2 + HIDDEN_DIM), jnp.float32)
        wf = wf.at[:GRAPH_DIM, :H2].set(w2b)
        wf = wf.at[GRAPH_DIM:, H2:].set(w1)
        first = (wf.astype(cd),)
    else:
        first = (w1.astype(cd), w2b.astype(cd))

    tensors = first + (
        w2a.astype(cd),
        b1[None, :].astype(jnp.float32),
        b2[None, :].astype(jnp.float32),
        w3.astype(cd), b3[None, :].astype(jnp.float32),
        w4.astype(cd), b4[None, :].astype(jnp.float32),
        w5.T.astype(jnp.float32),           # (1, 32) row for the VPU reduce
        b5[None, :].astype(jnp.float32),    # (1, 1)
    )
    return PreparedParams(bool(fuse_first_layers), tuple(tensors))


def meta_learner_forward(evolution_distance, graph_features, prepared,
                         *, block_batch=4096):
    """Fused MetaLearner forward.

    evolution_distance: (B, 72) or (72,); graph_features: (B, 72) or (72,).
    `prepared` comes from prepare_params() (a raw 10-tuple is also accepted).
    Returns (B, 1) float32.
    """
    if not isinstance(prepared, PreparedParams):
        prepared = prepare_params(prepared)

    ev = evolution_distance
    gf = graph_features
    if ev.ndim == 1:
        ev = ev[None, :]
    if gf.ndim == 1:
        gf = gf[None, :]
    B = ev.shape[0]

    # Batch tile: as big as useful (per-step pipeline overhead dominates small tiles).
    # If B is smaller than the cap, one block equal to the full batch is always
    # layout-legal; otherwise the last block is a boundary (partial) block handled by
    # Pallas -- no wrapper-side padding or dtype conversion.
    cap = max(8, _round_up(block_batch, 8))
    TB = cap if B >= cap else B
    grid = pl.cdiv(B, TB)

    batched = (ev, gf)
    resident = prepared.tensors
    kernel = _fused_kernel if prepared.fuse_first_layers else _split_kernel

    batched_spec = lambda a: pl.BlockSpec((TB, a.shape[1]), lambda i: (i, 0))
    resident_spec = lambda a: pl.BlockSpec(a.shape, lambda i: (0, 0))

    in_bytes = sum(a.size * a.dtype.itemsize for a in batched)
    w_bytes = sum(t.size * t.dtype.itemsize for t in resident)
    flops = 2 * B * (EVO_DIM * HIDDEN_DIM + HIDDEN_DIM * H2 + GRAPH_DIM * H2
                     + H2 * H3 + H3 * H4 + H4)
    cost = pl.CostEstimate(flops=flops, transcendentals=0,
                           bytes_accessed=in_bytes + w_bytes + B * 4)

    # VMEM budget: double-buffered batched inputs + ~2 KB/row f32 intermediates + slack.
    # Only raise the scoped limit past the 32 MiB default when actually needed; cap at
    # 64 MiB so the same setting is legal on v7x's smaller VMEM.
    vmem_est = TB * (2 * 2 * EVO_DIM * ev.dtype.itemsize + 2048) + (2 << 20)
    vmem_limit = None
    if vmem_est > (30 << 20):
        vmem_limit = int(min(vmem_est * 3 // 2, 64 << 20))

    out = pl.pallas_call(
        kernel,
        out_shape=jax.ShapeDtypeStruct((B, 1), jnp.float32),
        grid_spec=pltpu.PrefetchScalarGridSpec(
            num_scalar_prefetch=0,
            grid=(grid,),
            in_specs=([batched_spec(a) for a in batched]
                      + [resident_spec(t) for t in resident]),
            out_specs=pl.BlockSpec((TB, 1), lambda i: (i, 0)),
        ),
        compiler_params=pltpu.CompilerParams(
            # TODO(synk): on v7x verify "parallel" shards the batch axis across both
            # TensorCores; if not, switch to pltpu.CORE_PARALLEL / pl.core_map.
            dimension_semantics=("parallel",),
            vmem_limit_bytes=vmem_limit,
        ),
        cost_estimate=cost,
    )(*batched, *resident)

    return out


# ---------------------------------------------------------------------- init / reference

def init_params(key, evolution_distance_dim=EVO_DIM, hidden_dim=HIDDEN_DIM):
    """Deterministic PyTorch-style init (uniform +-1/sqrt(fan_in)).
    Weights stored as (in_features, out_features)."""
    dims = [
        (evolution_distance_dim, hidden_dim),   # evolution_processor Linear
        (hidden_dim + 72, 128),                 # feature_processor Linear 1
        (128, 64),                              # feature_processor Linear 2
        (64, 32),                               # feature_processor Linear 3
        (32, 1),                                # predictor
    ]
    params = []
    for fan_in, fan_out in dims:
        key, kw, kb = jax.random.split(key, 3)
        bound = 1.0 / jnp.sqrt(float(fan_in))
        w = jax.random.uniform(kw, (fan_in, fan_out), jnp.float32, -bound, bound)
        b = jax.random.uniform(kb, (fan_out,), jnp.float32, -bound, bound)
        params += [w, b]
    return tuple(params)


def _reference_forward_bf16(ev, gf, params):
    """Plain-JAX reference using the same bf16-compute / f32-accumulate recipe as the
    kernel (for validation)."""
    if ev.ndim == 1:
        ev = ev[None, :]
    if gf.ndim == 1:
        gf = gf[None, :]
    w1, b1, w2, b2, w3, b3, w4, b4, w5, b5 = params
    cd = _COMPUTE_DTYPE
    w2a, w2b = w2[:HIDDEN_DIM, :], w2[HIDDEN_DIM:, :]

    ev_feat = jnp.dot(ev.astype(cd), w1.astype(cd),
                      preferred_element_type=jnp.float32) + b1
    ev_feat = jax.nn.relu(ev_feat).astype(cd)
    h = (jnp.dot(ev_feat, w2a.astype(cd), preferred_element_type=jnp.float32)
         + jnp.dot(gf.astype(cd), w2b.astype(cd),
                   preferred_element_type=jnp.float32) + b2)
    h = jax.nn.relu(h).astype(cd)
    h = jnp.dot(h, w3.astype(cd), preferred_element_type=jnp.float32) + b3
    h = jax.nn.relu(h).astype(cd)
    h = jnp.dot(h, w4.astype(cd), preferred_element_type=jnp.float32) + b4
    h = jax.nn.relu(h)
    return jnp.sum(h * w5.T, axis=-1, keepdims=True) + b5


def _reference_forward_f32(ev, gf, params):
    """Full-precision reference (matches the PyTorch module exactly, eval mode)."""
    if ev.ndim == 1:
        ev = ev[None, :]
    if gf.ndim == 1:
        gf = gf[None, :]
    w1, b1, w2, b2, w3, b3, w4, b4, w5, b5 = params
    ev_feat = jax.nn.relu(ev @ w1 + b1)
    h = jnp.concatenate([ev_feat, gf], axis=1)
    h = jax.nn.relu(h @ w2 + b2)
    h = jax.nn.relu(h @ w3 + b3)
    h = jax.nn.relu(h @ w4 + b4)
    return h @ w5 + b5


# ------------------------------------------------------------------------------- demo

if __name__ == "__main__":
    key = jax.random.PRNGKey(0)
    kp, ke, kg = jax.random.split(key, 3)
    params = init_params(kp)

    B = 8
    ev = jax.random.normal(ke, (B, EVO_DIM), jnp.float32)
    gf = jax.random.normal(kg, (B, GRAPH_DIM), jnp.float32)

    ref_bf16 = _reference_forward_bf16(ev, gf, params)
    ref_f32 = _reference_forward_f32(ev, gf, params)

    # Exercise both first-layer variants regardless of which chip we are on.
    for fuse in (True, False):
        prep = prepare_params(params, fuse_first_layers=fuse)
        out = jax.block_until_ready(meta_learner_forward(ev, gf, prep))
        assert out.shape == (B, 1)
        assert jnp.allclose(out, ref_bf16, atol=2e-2, rtol=2e-2), \
            f"mismatch vs bf16 reference (fuse={fuse})"
        assert jnp.allclose(out, ref_f32, atol=1.5e-1, rtol=1.5e-1), \
            f"mismatch vs f32 reference (fuse={fuse})"

    # Auto-selected path, batch not divisible by the tile -> boundary (partial) blocks.
    prep_auto = prepare_params(params)
    B2 = 37
    ev2 = jax.random.normal(jax.random.PRNGKey(1), (B2, EVO_DIM), jnp.float32)
    gf2 = jax.random.normal(jax.random.PRNGKey(2), (B2, GRAPH_DIM), jnp.float32)
    out2 = jax.block_until_ready(
        meta_learner_forward(ev2, gf2, prep_auto, block_batch=16))
    assert out2.shape == (B2, 1)
    assert jnp.allclose(out2, _reference_forward_bf16(ev2, gf2, params),
                        atol=2e-2, rtol=2e-2), "mismatch on boundary-tiled batch"

    # 1-D inputs (module unsqueezes to batch 1).
    out1 = jax.block_until_ready(meta_learner_forward(ev[0], gf[0], prep_auto))
    assert out1.shape == (1, 1)
    assert jnp.allclose(out1, ref_bf16[:1], atol=2e-2, rtol=2e-2), "mismatch on 1-D input"

    print("KERNEL_OK")
</pallas_src>

<mosaic_0001>
module attributes {stable_mosaic.version = 11 : i64} {
  func.func @_fused_kernel(%arg0: i32, %arg1: memref<8x72xf32, #tpu.memory_space<vmem>>, %arg2: memref<8x72xf32, #tpu.memory_space<vmem>>, %arg3: memref<144x192xbf16, #tpu.memory_space<vmem>>, %arg4: memref<64x128xbf16, #tpu.memory_space<vmem>>, %arg5: memref<1x64xf32, #tpu.memory_space<vmem>>, %arg6: memref<1x128xf32, #tpu.memory_space<vmem>>, %arg7: memref<128x64xbf16, #tpu.memory_space<vmem>>, %arg8: memref<1x64xf32, #tpu.memory_space<vmem>>, %arg9: memref<64x32xbf16, #tpu.memory_space<vmem>>, %arg10: memref<1x32xf32, #tpu.memory_space<vmem>>, %arg11: memref<1x32xf32, #tpu.memory_space<vmem>>, %arg12: memref<1x1xf32, #tpu.memory_space<vmem>>, %arg13: memref<8x1xf32, #tpu.memory_space<vmem>>) attributes {dimension_semantics = [#tpu.dimension_semantics<parallel>], iteration_bounds = array<i64: 1>, scalar_prefetch = 0 : i64, scratch_operands = 0 : i64, tpu.core_type = #tpu.core_type<tc>, window_params = [{transform_indices = @transform_0, window_bounds = array<i64: 8, 72>}, {transform_indices = @transform_1, window_bounds = array<i64: 8, 72>}, {pipeline_mode = #tpu.pipeline_mode<synchronous>, transform_indices = @transform_2, window_bounds = array<i64: 144, 192>}, {pipeline_mode = #tpu.pipeline_mode<synchronous>, transform_indices = @transform_3, window_bounds = array<i64: 64, 128>}, {pipeline_mode = #tpu.pipeline_mode<synchronous>, transform_indices = @transform_4, window_bounds = array<i64: 1, 64>}, {pipeline_mode = #tpu.pipeline_mode<synchronous>, transform_indices = @transform_5, window_bounds = array<i64: 1, 128>}, {pipeline_mode = #tpu.pipeline_mode<synchronous>, transform_indices = @transform_6, window_bounds = array<i64: 128, 64>}, {pipeline_mode = #tpu.pipeline_mode<synchronous>, transform_indices = @transform_7, window_bounds = array<i64: 1, 64>}, {pipeline_mode = #tpu.pipeline_mode<synchronous>, transform_indices = @transform_8, window_bounds = array<i64: 64, 32>}, {pipeline_mode = #tpu.pipeline_mode<synchronous>, transform_indices = @transform_9, window_bounds = array<i64: 1, 32>}, {pipeline_mode = #tpu.pipeline_mode<synchronous>, transform_indices = @transform_10, window_bounds = array<i64: 1, 32>}, {pipeline_mode = #tpu.pipeline_mode<synchronous>, transform_indices = @transform_11, window_bounds = array<i64: 1, 1>}, {transform_indices = @transform_12, window_bounds = array<i64: 8, 1>}]} {
    %c0 = arith.constant 0 : index
    %c0_0 = arith.constant 0 : index
    %0 = vector.load %arg1[%c0, %c0_0] : memref<8x72xf32, #tpu.memory_space<vmem>>, vector<8x72xf32>
    %1 = arith.truncf %0 : vector<8x72xf32> to vector<8x72xbf16>
    %c0_1 = arith.constant 0 : index
    %c0_2 = arith.constant 0 : index
    %2 = vector.load %arg2[%c0_1, %c0_2] : memref<8x72xf32, #tpu.memory_space<vmem>>, vector<8x72xf32>
    %3 = arith.truncf %2 : vector<8x72xf32> to vector<8x72xbf16>
    %4 = tpu.concatenate %3, %1 in 1 : vector<8x72xbf16>, vector<8x72xbf16> -> vector<8x144xbf16>
    %c0_3 = arith.constant 0 : index
    %c0_4 = arith.constant 0 : index
    %5 = vector.load %arg3[%c0_3, %c0_4] : memref<144x192xbf16, #tpu.memory_space<vmem>>, vector<144x192xbf16>
    %cst = arith.constant dense<0.000000e+00> : vector<8x192xf32>
    %6 = tpu.matmul %4, %5, %cst {dimension_numbers = #tpu.dot_dimension_numbers<[1], [0], [0], [1], [0, 0, 1, 1], [], []>} : vector<8x144xbf16>, vector<144x192xbf16>, vector<8x192xf32> -> vector<8x192xf32>
    %7 = vector.extract_strided_slice %6 {offsets = [0, 0], sizes = [8, 128], strides = [1, 1]} : vector<8x192xf32> to vector<8x128xf32>
    %8 = vector.extract_strided_slice %6 {offsets = [0, 128], sizes = [8, 64], strides = [1, 1]} : vector<8x192xf32> to vector<8x64xf32>
    %c0_5 = arith.constant 0 : index
    %c0_6 = arith.constant 0 : index
    %9 = vector.load %arg5[%c0_5, %c0_6] : memref<1x64xf32, #tpu.memory_space<vmem>>, vector<1x64xf32>
    %10 = vector.broadcast %9 : vector<1x64xf32> to vector<8x64xf32>
    %11 = arith.addf %8, %10 : vector<8x64xf32>
    %cst_7 = arith.constant 0.000000e+00 : f32
    %12 = vector.broadcast %cst_7 : f32 to vector<8x64xf32>
    %13 = arith.maximumf %11, %12 : vector<8x64xf32>
    %14 = arith.truncf %13 : vector<8x64xf32> to vector<8x64xbf16>
    %c0_8 = arith.constant 0 : index
    %c0_9 = arith.constant 0 : index
    %15 = vector.load %arg4[%c0_8, %c0_9] : memref<64x128xbf16, #tpu.memory_space<vmem>>, vector<64x128xbf16>
    %cst_10 = arith.constant dense<0.000000e+00> : vector<8x128xf32>
    %16 = tpu.matmul %14, %15, %cst_10 {dimension_numbers = #tpu.dot_dimension_numbers<[1], [0], [0], [1], [0, 0, 1, 1], [], []>} : vector<8x64xbf16>, vector<64x128xbf16>, vector<8x128xf32> -> vector<8x128xf32>
    %17 = arith.addf %16, %7 : vector<8x128xf32>
    %c0_11 = arith.constant 0 : index
    %c0_12 = arith.constant 0 : index
    %18 = vector.load %arg6[%c0_11, %c0_12] : memref<1x128xf32, #tpu.memory_space<vmem>>, vector<1x128xf32>
    %19 = vector.broadcast %18 : vector<1x128xf32> to vector<8x128xf32>
    %20 = arith.addf %17, %19 : vector<8x128xf32>
    %cst_13 = arith.constant 0.000000e+00 : f32
    %21 = vector.broadcast %cst_13 : f32 to vector<8x128xf32>
    %22 = arith.maximumf %20, %21 : vector<8x128xf32>
    %23 = arith.truncf %22 : vector<8x128xf32> to vector<8x128xbf16>
    %c0_14 = arith.constant 0 : index
    %c0_15 = arith.constant 0 : index
    %24 = vector.load %arg7[%c0_14, %c0_15] : memref<128x64xbf16, #tpu.memory_space<vmem>>, vector<128x64xbf16>
    %cst_16 = arith.constant dense<0.000000e+00> : vector<8x64xf32>
    %25 = tpu.matmul %23, %24, %cst_16 {dimension_numbers = #tpu.dot_dimension_numbers<[1], [0], [0], [1], [0, 0, 1, 1], [], []>} : vector<8x128xbf16>, vector<128x64xbf16>, vector<8x64xf32> -> vector<8x64xf32>
    %c0_17 = arith.constant 0 : index
    %c0_18 = arith.constant 0 : index
    %26 = vector.load %arg8[%c0_17, %c0_18] : memref<1x64xf32, #tpu.memory_space<vmem>>, vector<1x64xf32>
    %27 = vector.broadcast %26 : vector<1x64xf32> to vector<8x64xf32>
    %28 = arith.addf %25, %27 : vector<8x64xf32>
    %cst_19 = arith.constant 0.000000e+00 : f32
    %29 = vector.broadcast %cst_19 : f32 to vector<8x64xf32>
    %30 = arith.maximumf %28, %29 : vector<8x64xf32>
    %31 = arith.truncf %30 : vector<8x64xf32> to vector<8x64xbf16>
    %c0_20 = arith.constant 0 : index
    %c0_21 = arith.constant 0 : index
    %32 = vector.load %arg9[%c0_20, %c0_21] : memref<64x32xbf16, #tpu.memory_space<vmem>>, vector<64x32xbf16>
    %cst_22 = arith.constant dense<0.000000e+00> : vector<8x32xf32>
    %33 = tpu.matmul %31, %32, %cst_22 {dimension_numbers = #tpu.dot_dimension_numbers<[1], [0], [0], [1], [0, 0, 1, 1], [], []>} : vector<8x64xbf16>, vector<64x32xbf16>, vector<8x32xf32> -> vector<8x32xf32>
    %c0_23 = arith.constant 0 : index
    %c0_24 = arith.constant 0 : index
    %34 = vector.load %arg10[%c0_23, %c0_24] : memref<1x32xf32, #tpu.memory_space<vmem>>, vector<1x32xf32>
    %35 = vector.broadcast %34 : vector<1x32xf32> to vector<8x32xf32>
    %36 = arith.addf %33, %35 : vector<8x32xf32>
    %cst_25 = arith.constant 0.000000e+00 : f32
    %37 = vector.broadcast %cst_25 : f32 to vector<8x32xf32>
    %38 = arith.maximumf %36, %37 : vector<8x32xf32>
    %c0_26 = arith.constant 0 : index
    %c0_27 = arith.constant 0 : index
    %39 = vector.load %arg11[%c0_26, %c0_27] : memref<1x32xf32, #tpu.memory_space<vmem>>, vector<1x32xf32>
    %40 = vector.broadcast %39 : vector<1x32xf32> to vector<8x32xf32>
    %41 = arith.mulf %38, %40 : vector<8x32xf32>
    %cst_28 = arith.constant dense<0.000000e+00> : vector<8xf32>
    %42 = vector.multi_reduction <add>, %41, %cst_28 [1] : vector<8x32xf32> to vector<8xf32>
    %43 = vector.shape_cast %42 : vector<8xf32> to vector<8x1xf32>
    %c0_29 = arith.constant 0 : index
    %c0_30 = arith.constant 0 : index
    %44 = vector.load %arg12[%c0_29, %c0_30] : memref<1x1xf32, #tpu.memory_space<vmem>>, vector<1x1xf32>
    %45 = vector.broadcast %44 : vector<1x1xf32> to vector<8x1xf32>
    %46 = arith.addf %43, %45 : vector<8x1xf32>
    %c0_31 = arith.constant 0 : index
    %c0_32 = arith.constant 0 : index
    %47 = vector.load %arg13[%c0_31, %c0_32] : memref<8x1xf32, #tpu.memory_space<vmem>>, vector<8x1xf32>
    tpu.vector_store %arg13[%c0_31, %c0_32], %46 {strides = array<i32>} : memref<8x1xf32, #tpu.memory_space<vmem>>, vector<8x1xf32>,
    return
  }
  func.func @transform_0(%arg0: i32) -> (i32, i32) {
    %c0_i32 = arith.constant 0 : i32
    %c0_i32_0 = arith.constant 0 : i32
    return %arg0, %c0_i32 : i32, i32
  }
  func.func @transform_1(%arg0: i32) -> (i32, i32) {
    %c0_i32 = arith.constant 0 : i32
    %c0_i32_0 = arith.constant 0 : i32
    return %arg0, %c0_i32 : i32, i32
  }
  func.func @transform_2(%arg0: i32) -> (i32, i32) {
    %c0_i32 = arith.constant 0 : i32
    %c0_i32_0 = arith.constant 0 : i32
    %c0_i32_1 = arith.constant 0 : i32
    return %c0_i32, %c0_i32_0 : i32, i32
  }
  func.func @transform_3(%arg0: i32) -> (i32, i32) {
    %c0_i32 = arith.constant 0 : i32
    %c0_i32_0 = arith.constant 0 : i32
    %c0_i32_1 = arith.constant 0 : i32
    return %c0_i32, %c0_i32_0 : i32, i32
  }
  func.func @transform_4(%arg0: i32) -> (i32, i32) {
    %c0_i32 = arith.constant 0 : i32
    %c0_i32_0 = arith.constant 0 : i32
    %c0_i32_1 = arith.constant 0 : i32
    return %c0_i32, %c0_i32_0 : i32, i32
  }
  func.func @transform_5(%arg0: i32) -> (i32, i32) {
    %c0_i32 = arith.constant 0 : i32
    %c0_i32_0 = arith.constant 0 : i32
    %c0_i32_1 = arith.constant 0 : i32
    return %c0_i32, %c0_i32_0 : i32, i32
  }
  func.func @transform_6(%arg0: i32) -> (i32, i32) {
    %c0_i32 = arith.constant 0 : i32
    %c0_i32_0 = arith.constant 0 : i32
    %c0_i32_1 = arith.constant 0 : i32
    return %c0_i32, %c0_i32_0 : i32, i32
  }
  func.func @transform_7(%arg0: i32) -> (i32, i32) {
    %c0_i32 = arith.constant 0 : i32
    %c0_i32_0 = arith.constant 0 : i32
    %c0_i32_1 = arith.constant 0 : i32
    return %c0_i32, %c0_i32_0 : i32, i32
  }
  func.func @transform_8(%arg0: i32) -> (i32, i32) {
    %c0_i32 = arith.constant 0 : i32
    %c0_i32_0 = arith.constant 0 : i32
    %c0_i32_1 = arith.constant 0 : i32
    return %c0_i32, %c0_i32_0 : i32, i32
  }
  func.func @transform_9(%arg0: i32) -> (i32, i32) {
    %c0_i32 = arith.constant 0 : i32
    %c0_i32_0 = arith.constant 0 : i32
    %c0_i32_1 = arith.constant 0 : i32
    return %c0_i32, %c0_i32_0 : i32, i32
  }
  func.func @transform_10(%arg0: i32) -> (i32, i32) {
    %c0_i32 = arith.constant 0 : i32
    %c0_i32_0 = arith.constant 0 : i32
    %c0_i32_1 = arith.constant 0 : i32
    return %c0_i32, %c0_i32_0 : i32, i32
  }
  func.func @transform_11(%arg0: i32) -> (i32, i32) {
    %c0_i32 = arith.constant 0 : i32
    %c0_i32_0 = arith.constant 0 : i32
    %c0_i32_1 = arith.constant 0 : i32
    return %c0_i32, %c0_i32_0 : i32, i32
  }
  func.func @transform_12(%arg0: i32) -> (i32, i32) {
    %c0_i32 = arith.constant 0 : i32
    %c0_i32_0 = arith.constant 0 : i32
    return %arg0, %c0_i32 : i32, i32
  }
}

</mosaic_0001>

<bundles_post_ra>
// kernel: tpu_custom_call.1
= control target key start
LH: loop header
LB: loop body
LE: loop exit
PB: predicated region body
PF: predicated region fallthrough
CT: control target
= control target key end

     0   :  { %s999_s0 = inlined_call_operand.vmem [shape: f32[8,72], index: 0, kind: input, shape index: {}]   ;;  %s1000_s1 = inlined_call_operand.hbm [shape: f32[8,72], index: 1, kind: input, shape index: {}]   ;;  %s1001_s2 = inlined_call_operand.vmem [shape: bf16[144,192], index: 2, kind: input, shape index: {}]   ;;  %s1002_s3 = inlined_call_operand.hbm [shape: bf16[64,128], index: 3, kind: input, shape index: {}]   ;;  %s1003_s4 = inlined_call_operand.vmem [shape: f32[1,64], index: 4, kind: input, shape index: {}]   ;;  %s1004_s5 = inlined_call_operand.vmem [shape: f32[1,128], index: 5, kind: input, shape index: {}]   ;;  %s1005_s6 = inlined_call_operand.vmem [shape: bf16[128,64], index: 6, kind: input, shape index: {}]   ;;  %s1006_s7 = inlined_call_operand.vmem [shape: f32[1,64], index: 7, kind: input, shape index: {}]   ;;  %s1007_s8 = inlined_call_operand.vmem [shape: bf16[64,32], index: 8, kind: input, shape index: {}]   ;;  %s1008_s9 = inlined_call_operand.vmem [shape: f32[1,32], index: 9, kind: input, shape index: {}]   ;;  %s1009_s10 = inlined_call_operand.vmem [shape: f32[1,32], index: 10, kind: input, shape index: {}]   ;;  %s1010_s11 = inlined_call_operand.<no memory space> [shape: f32[1,1], index: 11, kind: input, shape index: {}]   ;;  %s1011_s12 = inlined_call_operand.vmem [shape: f32[8,1], index: 12, kind: output, shape index: {}]  }
   0x1   :  { %v17_v0 = vstv %s1010_s11 }
   0x2   :  { %18 = vst [vmem:[#allocation2] sm:$0x1] %v17_v0 }
   0x3   :  { %19 = vsyncpa [#allocation4], 0 }
   0x4   :  { %20 = vsyncpa [#allocation6], 0  ;;  %s758_s23 = smov [#allocation3]   ;;  %s759_s25 = smov [#allocation5]  }
   0x5   :  { %s29_s24 = sshll.u32 %s758_s23, 4  ;;  %s40_s26 = sshll.u32 %s759_s25, 4  ;;  %s30_s24 = int_to_ptr.vmem [resolvable:$true] %s29_s24  ;;  %s833_s26 = int_to_ptr.vmem [resolvable:$true] %s40_s26 }
   0x6   :  { %s710_s29 = scalar_lea.hbm %s1000_s1, 128 }
   0x7   :  { %p711_p0 = scmp.ne.s32.totalorder %s1000_s1, %s710_s29  ;;  %p714_p1 = scmp.lt.u32.totalorder %s710_s29, %s1000_s1 }
   0x9   :  { %p716_p2 = pnand %p714_p1, %p711_p0 }
   0xb   :  { %719 = shalt.err (!%p716_p2)
}
   0xc   :  { %s720_s15 = scalar_lea.vmem %s30_s24, 128  ;;  %p725_p4 = scmp.lt.s32.totalorder %s30_s24, %s30_s24 }
   0xd   :  { %p721_p3 = scmp.ne.s32.totalorder %s30_s24, %s720_s15  ;;  %p726_p5 = scmp.lt.s32.totalorder %s720_s15, %s720_s15 }
   0xf   :  { %p727_p6 = por %p726_p5, %p725_p4 }
  0x11   :  { %p728_p7 = pnand %p727_p6, %p721_p3 }
  0x13   :  { %731 = shalt.err (!%p728_p7)
}
  0x14   :  { %32 = dma.hbm_to_vmem [thread:$0]  %s1000_s1, 128, %s30_s24, [#allocation4]  }
  0x15   :  { %s732_s20 = scalar_lea.hbm %s1002_s3, 512 }
  0x16   :  { %p733_p8 = scmp.ne.s32.totalorder %s1002_s3, %s732_s20  ;;  %p736_p9 = scmp.lt.u32.totalorder %s732_s20, %s1002_s3 }
  0x18   :  { %p738_p10 = pnand %p736_p9, %p733_p8 }
  0x1a   :  { %741 = shalt.err (!%p738_p10)
}
  0x1b   :  { %s742_s27 = scalar_lea.vmem %s833_s26, 512  ;;  %p747_p12 = scmp.lt.s32.totalorder %s833_s26, %s833_s26 }
  0x1c   :  { %p743_p11 = scmp.ne.s32.totalorder %s833_s26, %s742_s27  ;;  %p748_p13 = scmp.lt.s32.totalorder %s742_s27, %s742_s27 }
  0x1e   :  { %p749_p0 = por %p748_p13, %p747_p12 }
  0x20   :  { %p750_p1 = pnand %p749_p0, %p743_p11 }
  0x22   :  { %753 = shalt.err (!%p750_p1)
}
  0x23   :  { %s760_s1 = smov 64   ;;  %s761_s24 = smov 4  }
  0x24   :  { %46 = dma.hbm_to_vmem [thread:$0]  %s1002_s3, 512, %s833_s26, [#allocation6], %s760_s1, %s760_s1, %s761_s24  }
  0x25   :  { %754 = dma.done.wait [#allocation4], 128  }
  0x26   :  { %755 = vsyncadd [#allocation4], 4294967168 }
  0x27   :  { %756 = dma.done.wait [#allocation6], 512  }
  0x28   :  { %757 = vsyncadd [#allocation6], 4294966784  ;;  %v762_v1 = vmov 0.0   ;;  %v70_v2 = vld [vmem:[%s999_s0] sm:$0xff]  ;;  %v670_v6 = vld [vmem:[%s1001_s2 + $0x14] ss:$8 sps:$4 sm:$0xff]  }
  0x29   :  { %616 = vmatprep.subr.bf16.mxu1 %v762_v1  ;;  %v71_v3 = vpack.c.bf16 %v70_v2, %v70_v2  ;;  %v667_v4 = vld [vmem:[%s1001_s2 + $0x4] ss:$8 sps:$4 sm:$0xff]   ;;  %v669_v5 = vld [vmem:[%s1001_s2] ss:$8 sps:$4 sm:$0xff]   ;;  %s763_s17 = smov 72   ;;  %v695_v15 = vld [vmem:[#allocation5 + $0x8] sm:$0xff]  }
  0x2a   :  { %193 = vmatprep.subr.bf16.mxu0 %v667_v4  ;;  %v672_v7 = vld [vmem:[%s1001_s2 + $0x10] ss:$8 sps:$4 sm:$0xff]   ;;  %v673_v8 = vld [vmem:[%s1001_s2 + $0x24] ss:$8 sps:$4 sm:$0xff]   ;;  %v675_v9 = vld [vmem:[%s1001_s2 + $0x20] ss:$8 sps:$4 sm:$0xff]  }
  0x2b   :  { %75 = vrot.lane.b32.xlu0 %v71_v3, %s763_s17  ;;  %194 = vmatpush1.bf16.msra.mxu0 %v669_v5  ;;  %v676_v10 = vld [vmem:[%s1001_s2 + $0x34] ss:$8 sps:$4 sm:$0xff]   ;;  %v678_v11 = vld [vmem:[%s1001_s2 + $0x30] ss:$8 sps:$4 sm:$0xff]   ;;  %v679_v12 = vld [vmem:[%s1001_s2 + $0x44] ss:$8 sps:$4 sm:$0xff]  }
  0x2c   :  { %195 = vmatprep.subr.bf16.mxu0 %v670_v6  ;;  %v694_v13 = vld [vmem:[#allocation5] sm:$0xff]   ;;  %v682_v16 = vld [vmem:[%s1001_s2 + $0x54] ss:$8 sps:$4 sm:$0xff]   ;;  %v72_v24 = vld [vmem:[#allocation3] sm:$0xff]  ;;  %vm190_vm0 = vcmask 130048   ;;  %vm77_vm1 = vcmask 588800  }
  0x2d   :  { %v681_v14 = vld [vmem:[%s1001_s2 + $0x40] ss:$8 sps:$4 sm:$0xff]   ;;  %617 = vmatpush3.bf16.msra.mxu1 %v694_v13  ;;  %v684_v17 = vld [vmem:[%s1001_s2 + $0x50] ss:$8 sps:$4 sm:$0xff]   ;;  %v685_v18 = vld [vmem:[%s1001_s2 + $0x64] ss:$8 sps:$4 sm:$0xff]   ;;  %v73_v25 = vpack.c.bf16 %v72_v24, %v72_v24 }
  0x2e   :  { %618 = vmatprep.subr.bf16.mxu1 %v762_v1  ;;  %v687_v19 = vld [vmem:[%s1001_s2 + $0x60] ss:$8 sps:$4 sm:$0xff]   ;;  %v688_v20 = vld [vmem:[%s1001_s2 + $0x74] ss:$8 sps:$4 sm:$0xff]   ;;  %v690_v21 = vld [vmem:[%s1001_s2 + $0x70] ss:$8 sps:$4 sm:$0xff]  }
  0x2f   :  { %196 = vmatpush1.bf16.msra.mxu0 %v672_v7  ;;  %v691_v22 = vld [vmem:[%s1001_s2 + $0x84] ss:$8 sps:$4 sm:$0xff]   ;;  %v693_v23 = vld [vmem:[%s1001_s2 + $0x80] ss:$8 sps:$4 sm:$0xff]   ;;  %vm764_vm2 = vmmov 0   ;;  %vm276_vm3 = vcmask 523264  }
  0x30   :  { %197 = vmatprep.subr.bf16.mxu0 %v673_v8  ;;  %v696_v28 = vld [vmem:[#allocation5 + $0x10] sm:$0xff]   ;;  %v697_v29 = vld [vmem:[#allocation5 + $0x18] sm:$0xff]   ;;  %624 = vmatprep.mubr.msk.bf16.mxu1 %vm764_vm2, %v762_v1  ;;  %v700_v40 = vld [vmem:[%s1005_s6 + $0x10] sm:$0xff]   ;;  %vm534_vm4 = vcmask 261120   ;;  %vm546_vm5 = vcmask 7168  }
  0x31   :  { %619 = vmatpush3.bf16.msra.mxu1 %v695_v15  ;;  %v573_v30 = vld [vmem:[%s1003_s4] ss:$0 sm:$0xff]  ;;  %v699_v39 = vld [vmem:[%s1005_s6 + $0x8] sm:$0xff]   ;;  %v701_v41 = vld [vmem:[%s1005_s6 + $0x18] sm:$0xff]  }
  0x32   :  { %620 = vmatprep.subr.bf16.mxu1 %v762_v1  ;;  %v698_v37 = vld [vmem:[%s1005_s6] sm:$0xff]   ;;  %v703_v43 = vld [vmem:[%s1005_s6 + $0x28] sm:$0xff]   ;;  %v704_v44 = vld [vmem:[%s1005_s6 + $0x30] sm:$0xff]  }
  0x33   :  { %198 = vmatpush1.bf16.msra.mxu0 %v675_v9  ;;  %v702_v42 = vld [vmem:[%s1005_s6 + $0x20] sm:$0xff]   ;;  %v705_v45 = vld [vmem:[%s1005_s6 + $0x38] sm:$0xff]   ;;  %v707_v47 = vld [vmem:[%s1007_s8 + $0x8] sm:$0xff]  }
  0x34   :  { %199 = vmatprep.subr.bf16.mxu0 %v676_v10  ;;  %v706_v46 = vld [vmem:[%s1007_s8] sm:$0xff]   ;;  %v708_v57 = vld [vmem:[%s1007_s8 + $0x10] sm:$0xff]   ;;  %v709_v58 = vld [vmem:[%s1007_s8 + $0x18] sm:$0xff]  }
  0x35   :  { %621 = vmatpush3.bf16.msra.mxu1 %v696_v28  ;;  %v579_v49 = vld [vmem:[%s1004_s5] ss:$0 sm:$0xff] }
  0x36   :  { %622 = vmatprep.subr.bf16.mxu1 %v762_v1  ;;  %v580_v59 = vld [vmem:[%s1006_s7] ss:$0 sm:$0xff] }
  0x37   :  { %200 = vmatpush1.bf16.msra.mxu0 %v678_v11  ;;  %v595_v8 = vld [vmem:[%s1009_s10] ss:$0 sm:$0xff] }
  0x38   :  { %201 = vmatprep.subr.bf16.mxu0 %v679_v12  ;;  %v596_v13 = vld [vmem:[#allocation2] ss:$0 sm:$0xff] }
  0x39   :  { %623 = vmatpush3.bf16.msra.mxu1 %v697_v29 }
  0x3a   :  { %628 = vmatprep.subr.bf16.mxu1 %v762_v1 }
  0x3b   :  { %202 = vmatpush1.bf16.msra.mxu0 %v681_v14 }
  0x3c   :  { %203 = vmatprep.subr.bf16.mxu0 %v682_v16 }
  0x3f   :  { %204 = vmatpush1.bf16.msra.mxu0 %v684_v17 }
  0x40   :  { %205 = vmatprep.subr.bf16.mxu0 %v685_v18 }
  0x43   :  { %206 = vmatpush1.bf16.msra.mxu0 %v687_v19 }
  0x44   :  { %207 = vmatprep.subr.bf16.mxu0 %v688_v20 }
  0x47   :  { %208 = vmatpush1.bf16.msra.mxu0 %v690_v21 }
  0x48   :  { %209 = vmatprep.subr.bf16.mxu0 %v691_v22 }
  0x4b   :  { %210 = vmatpush1.bf16.msra.mxu0 %v693_v23 }
  0x4c   :  { %648 = vmatprep.subr.bf16.mxu0 %v762_v1 }
  0x9d   :  { %v76_v26 = vpop.permute.xlu0 %75 }
  0x9e   :  { %572 = vmatprep.mubr.msk.bf16.mxu0 %vm190_vm0, %v76_v26  ;;  %v80_v27 = vsel %vm77_vm1, %v73_v25, %v76_v26 }
  0x9f   :  { %226 = vmatmul.mubr.bf16.vlgmr.msra.gmra.mrb[0].mxu0 %v80_v27 }
  0xa0   :  { %656 = vmatprep.mubr.msk.bf16.mxu0 %vm764_vm2, %v762_v1  ;;  %649 = vmatpush3.bf16.msra.mxu0 %v706_v46 }
  0xa1   :  { %650 = vmatprep.subr.bf16.mxu0 %v762_v1 }
  0xa4   :  { %651 = vmatpush3.bf16.msra.mxu0 %v707_v47 }
  0xa5   :  { %652 = vmatprep.subr.bf16.mxu0 %v762_v1 }
  0xa8   :  { %653 = vmatpush3.bf16.msra.mxu0 %v708_v57 }
  0xa9   :  { %654 = vmatprep.subr.bf16.mxu0 %v762_v1 }
  0xac   :  { %655 = vmatpush3.bf16.msra.mxu0 %v709_v58 }
 0x172   :  { %v227_v31 = vpop.f32.mrb[0].mxu0 }
 0x173   :  { %v229_v32 = vpop.f32.mrb[1].mxu0 }
 0x174   :  { %v241_v33 = vadd.f32 %v573_v30, %v229_v32  ;;  %v231_v34 = vpop.f32.mrb[2].mxu0 }
 0x175   :  { %v232_v35 = vpop.f32.mrb[3].mxu0 }
 0x176   :  { %v242_v36 = vmax.f32 %v241_v33, 0.0 }
 0x178   :  { %v243_v38 = vpack.c.bf16 %v242_v36, %v242_v36 }
 0x17a   :  { %625 = vmatmul.mubr.msk.bf16.vlgmr.msra.gmra.mrb[0].mxu1 %vm276_vm3, %v243_v38 }
 0x17b   :  { %629 = vmatpush3.bf16.msra.mxu1 %v698_v37  ;;  %644 = vmatprep.mubr.msk.bf16.mxu1 %vm764_vm2, %v762_v1 }
 0x17c   :  { %630 = vmatprep.subr.bf16.mxu1 %v762_v1 }
 0x17f   :  { %631 = vmatpush3.bf16.msra.mxu1 %v699_v39 }
 0x180   :  { %632 = vmatprep.subr.bf16.mxu1 %v762_v1 }
 0x183   :  { %633 = vmatpush3.bf16.msra.mxu1 %v700_v40 }
 0x184   :  { %634 = vmatprep.subr.bf16.mxu1 %v762_v1 }
 0x187   :  { %635 = vmatpush3.bf16.msra.mxu1 %v701_v41 }
 0x188   :  { %636 = vmatprep.subr.bf16.mxu1 %v762_v1 }
 0x18b   :  { %637 = vmatpush3.bf16.msra.mxu1 %v702_v42 }
 0x18c   :  { %638 = vmatprep.subr.bf16.mxu1 %v762_v1 }
 0x18f   :  { %639 = vmatpush3.bf16.msra.mxu1 %v703_v43 }
 0x190   :  { %640 = vmatprep.subr.bf16.mxu1 %v762_v1 }
 0x193   :  { %641 = vmatpush3.bf16.msra.mxu1 %v704_v44 }
 0x194   :  { %642 = vmatprep.subr.bf16.mxu1 %v762_v1  ;;  %v589_v1 = vld [vmem:[%s1008_s9] ss:$0 sm:$0xff] }
 0x197   :  { %643 = vmatpush3.bf16.msra.mxu1 %v705_v45 }
 0x24d   :  { %v314_v48 = vpop.f32.mrb[0].mxu1 }
 0x24e   :  { %v315_v50 = vadd.f32 %v314_v48, %v227_v31  ;;  %v626_v51 = vpop.f32.mrb[1].mxu1 }
 0x24f   :  { %v317_v52 = vpop.f32.mrb[2].mxu1 }
 0x250   :  { %v327_v53 = vadd.f32 %v579_v49, %v315_v50  ;;  %v627_v54 = vpop.f32.mrb[3].mxu1 }
 0x252   :  { %v328_v55 = vmax.f32 %v327_v53, 0.0 }
 0x254   :  { %v329_v56 = vpack.c.bf16 %v328_v55, %v328_v55 }
 0x256   :  { %645 = vmatmul.mubr.bf16.vlgmr.msra.gmra.mrb[4].mxu1 %v329_v56 }
 0x329   :  { %v435_v60 = vpop.f32.mrb[4].mxu1 }
 0x32a   :  { %v436_v61 = vadd.f32 %v580_v59, %v435_v60  ;;  %v646_v62 = vpop.f32.mrb[5].mxu1 }
 0x32b   :  { %v438_v63 = vpop.f32.mrb[6].mxu1 }
 0x32c   :  { %v441_v0 = vmax.f32 %v436_v61, 0.0  ;;  %v647_v2 = vpop.f32.mrb[7].mxu1 }
 0x32e   :  { %v442_v3 = vpack.c.bf16 %v441_v0, %v441_v0 }
 0x330   :  { %657 = vmatmul.mubr.msk.bf16.vlgmr.msra.gmra.mrb[4].mxu0 %vm276_vm3, %v442_v3 }
 0x403   :  { %v519_v4 = vpop.f32.mrb[4].mxu0 }
 0x404   :  { %v520_v5 = vadd.f32 %v589_v1, %v519_v4  ;;  %v658_v6 = vpop.f32.mrb[5].mxu0 }
 0x405   :  { %v522_v7 = vpop.f32.mrb[6].mxu0 }
 0x406   :  { %v525_v9 = vmax.f32 %v520_v5, 0.0  ;;  %v659_v10 = vpop.f32.mrb[7].mxu0 }
 0x408   :  { %v533_v11 = vmul.f32 %v595_v8, %v525_v9 }
 0x40a   :  { %v535_v12 = vsel %vm534_vm4, %v533_v11, 0.0 }
 0x40b   :  { %536 = vadd.xlane.f32.xlu0 %v535_v12 }
 0x498   :  { %v537_v14 = vpop.xlane.xlu0 %536 }
 0x499   :  { %v545_v15 = vadd.f32 %v596_v13, %v537_v14 }
 0x49b   :  { %547 = vst.msk [vmem:[%s1011_s12] sm:$0xff] %vm546_vm5, %v545_v15 }
 0x49c   :  { %552 = vsyncpa [#allocation4], 1 }
 0x49d   :  { %553 = vsyncpa [#allocation6], 1 }

</bundles_post_ra>
